<compile_context>
chip_gen: v6e
topology: v6e:2x2x1
jax: 0.10.0
libtpu: 0.0.40
codegen_flags: <defaults>
</compile_context>

<pallas_src>
import functools
import math

import jax
import jax.numpy as jnp
from jax import lax
from jax.experimental import pallas as pl
from jax.experimental.pallas import tpu as pltpu


# Safe on v5e/v6e (128 MiB physical) and leaves headroom on v7x (64 MiB).
VMEM_LIMIT_BYTES = 48 * 1024 * 1024


def _pick_tile(dim, target):
    """Largest multiple of 8 that divides `dim` and is <= target, else `dim`."""
    if dim <= target:
        return dim
    start = target - (target % 8)
    for cand in range(start, 7, -8):
        if dim % cand == 0:
            return cand
    return dim


# ---------------------------------------------------------------------------
# Kernel 1: fused QKV projection (scale folded into q).
# ---------------------------------------------------------------------------
def _qkv_kernel(x_ref, w_ref, b_ref, q_ref, k_ref, v_ref, *, D3, scale,
                compute_dtype):
    x = x_ref[0].astype(compute_dtype)                    # (tm, N)
    w = w_ref[...]                                        # (N, 3*D3), pre-cast
    y = jnp.dot(x, w, preferred_element_type=jnp.float32) + b_ref[...]
    # Fold 1/sqrt(d) into q once per row instead of per (t, t) score tile.
    q_ref[0] = (y[:, 0 * D3:1 * D3] * scale).astype(q_ref.dtype)
    k_ref[0] = y[:, 1 * D3:2 * D3].astype(k_ref.dtype)
    v_ref[0] = y[:, 2 * D3:3 * D3].astype(v_ref.dtype)


# ---------------------------------------------------------------------------
# Kernel 2: flash-style causal attention over KV tiles + fused output proj.
# ---------------------------------------------------------------------------
def _attn_proj_kernel(q_ref, k_ref, v_ref, wp_ref, bp_ref, o_ref,
                      m_ref, l_ref, acc_ref, ctx_ref,
                      *, num_head, head_dim, masked_bias, compute_dtype):
    qi = pl.program_id(1)
    ki = pl.program_id(2)
    t = q_ref.shape[1]                                    # q/kv tile size

    @pl.when(ki == 0)
    def _init():
        m_ref[...] = jnp.full_like(m_ref, -jnp.inf)
        l_ref[...] = jnp.zeros_like(l_ref)
        acc_ref[...] = jnp.zeros_like(acc_ref)

    # KV tiles strictly above the diagonal are fully masked; with the GPT-2
    # masked_bias (-1e4) their softmax weight underflows to exactly 0 in f32,
    # so skipping them is numerically equivalent and halves the work.
    @pl.when(ki <= qi)
    def _compute():
        row = lax.broadcasted_iota(jnp.int32, (t, t), 0)
        col = lax.broadcasted_iota(jnp.int32, (t, t), 1)
        # Mask only bites on the diagonal tile (tq == tk); off-diagonal tiles
        # are fully visible and the select is a no-op there.
        diag_mask = jnp.logical_and(col > row, ki == qi)

        for h in range(num_head):
            lo = h * head_dim
            hi = lo + head_dim
            qh = q_ref[0, :, lo:hi]                       # (t, d) compute_dtype
            kh = k_ref[0, :, lo:hi]
            vh = v_ref[0, :, lo:hi]

            s = lax.dot_general(                          # q @ k^T, f32 acc
                qh, kh, (((1,), (1,)), ((), ())),
                preferred_element_type=jnp.float32)
            s = jnp.where(diag_mask, masked_bias, s)      # GPT-2 style mask

            m_prev = m_ref[h]                             # (t, 1) f32 stats
            m_new = jnp.maximum(m_prev, jnp.max(s, axis=-1, keepdims=True))
            alpha = jnp.exp(m_prev - m_new)
            p = jnp.exp(s - m_new)                        # f32 softmax math
            l_ref[h] = alpha * l_ref[h] + jnp.sum(p, axis=-1, keepdims=True)
            acc_ref[h] = alpha * acc_ref[h] + lax.dot_general(
                p.astype(compute_dtype), vh, (((1,), (0,)), ((), ())),
                preferred_element_type=jnp.float32)
            m_ref[h] = m_new

    # The diagonal tile is the last KV tile contributing to this q tile.
    # Normalize, assemble all heads lane-dense into ctx, then apply the output
    # projection here (fused): saves a full HBM round trip of the attention
    # output.  The (b, qi)-indexed output block is flushed after the last ki.
    @pl.when(ki == qi)
    def _finalize():
        for h in range(num_head):
            lo = h * head_dim
            inv_l = pl.reciprocal(l_ref[h], approx=True)  # EUP vrcp slot
            ctx_ref[:, lo:lo + head_dim] = (
                acc_ref[h] * inv_l).astype(ctx_ref.dtype)
        o_ref[0] = (jnp.dot(ctx_ref[...], wp_ref[...],
                            preferred_element_type=jnp.float32)
                    + bp_ref[...]).astype(o_ref.dtype)


# ---------------------------------------------------------------------------
# Wrapper: full AttentionBlock forward.
# ---------------------------------------------------------------------------
def attention_block_forward(x, w_attn, w_proj, b_attn, b_proj, masked_bias,
                            num_head, *, compute_dtype=jnp.bfloat16,
                            row_tile=256, seq_tile=256):
    B, M, N = x.shape
    D_attn = w_attn.shape[1]
    D3 = D_attn // 3
    H = num_head
    assert D3 % H == 0
    d = D3 // H
    out_dtype = x.dtype

    if b_attn is None:
        b_attn = jnp.zeros((D_attn,), jnp.float32)
    if b_proj is None:
        b_proj = jnp.zeros((N,), jnp.float32)

    # Weights are read once per pallas_call (constant index_map); pre-cast to
    # the MXU input dtype so the VMEM-resident copies are half-size and the
    # kernels do zero per-step weight conversion.  Biases stay f32 (added to
    # the f32 accumulator).
    w_attn_c = w_attn.astype(compute_dtype)
    w_proj_c = w_proj.astype(compute_dtype)
    b_attn_c = b_attn.reshape(1, D_attn).astype(jnp.float32)
    b_proj_c = b_proj.reshape(1, N).astype(jnp.float32)

    tm = _pick_tile(M, row_tile)     # row tile for the QKV projection
    t = _pick_tile(M, seq_tile)      # q / kv tile for attention (tq == tk)
    nq = M // t
    esize = jnp.dtype(compute_dtype).itemsize
    scale = 1.0 / math.sqrt(d)

    # ----------------------- QKV projection -----------------------
    qkv_cost = pl.CostEstimate(
        flops=2 * B * M * N * D_attn,
        transcendentals=0,
        bytes_accessed=(x.size * x.dtype.itemsize
                        + w_attn_c.size * esize
                        + 3 * B * M * D3 * esize))
    q, k, v = pl.pallas_call(
        functools.partial(_qkv_kernel, D3=D3, scale=scale,
                          compute_dtype=compute_dtype),
        grid=(B, M // tm),
        in_specs=[
            pl.BlockSpec((1, tm, N), lambda b, i: (b, i, 0)),
            pl.BlockSpec((N, D_attn), lambda b, i: (0, 0)),  # weight resident
            pl.BlockSpec((1, D_attn), lambda b, i: (0, 0)),
        ],
        out_specs=[
            pl.BlockSpec((1, tm, D3), lambda b, i: (b, i, 0)),
            pl.BlockSpec((1, tm, D3), lambda b, i: (b, i, 0)),
            pl.BlockSpec((1, tm, D3), lambda b, i: (b, i, 0)),
        ],
        out_shape=[
            jax.ShapeDtypeStruct((B, M, D3), compute_dtype),
            jax.ShapeDtypeStruct((B, M, D3), compute_dtype),
            jax.ShapeDtypeStruct((B, M, D3), compute_dtype),
        ],
        compiler_params=pltpu.CompilerParams(
            dimension_semantics=("parallel", "parallel"),
            vmem_limit_bytes=VMEM_LIMIT_BYTES),
        cost_estimate=qkv_cost,
    )(x, w_attn_c, b_attn_c)

    # ------------- causal flash attention + fused output proj -------------
    attn_cost = pl.CostEstimate(
        flops=2 * B * H * M * M * d + 2 * B * M * D3 * N,  # causal ~halves 1st
        transcendentals=B * H * M * M // 2,
        bytes_accessed=(3 * B * M * D3 * esize
                        + D3 * N * esize
                        + B * M * N * jnp.dtype(out_dtype).itemsize))
    out = pl.pallas_call(
        functools.partial(_attn_proj_kernel, num_head=H, head_dim=d,
                          masked_bias=float(masked_bias),
                          compute_dtype=compute_dtype),
        grid=(B, nq, nq),
        in_specs=[
            pl.BlockSpec((1, t, D3), lambda b, qi, ki: (b, qi, 0)),
            # Fully-masked KV tiles (ki > qi) re-use the diagonal tile's block
            # index so the pipeline skips their HBM fetch entirely.
            pl.BlockSpec((1, t, D3),
                         lambda b, qi, ki: (b, jnp.minimum(ki, qi), 0)),
            pl.BlockSpec((1, t, D3),
                         lambda b, qi, ki: (b, jnp.minimum(ki, qi), 0)),
            pl.BlockSpec((D3, N), lambda b, qi, ki: (0, 0)),   # proj weight
            pl.BlockSpec((1, N), lambda b, qi, ki: (0, 0)),    # proj bias
        ],
        out_specs=pl.BlockSpec((1, t, N), lambda b, qi, ki: (b, qi, 0)),
        out_shape=jax.ShapeDtypeStruct((B, M, N), out_dtype),
        scratch_shapes=[
            pltpu.VMEM((H, t, 1), jnp.float32),   # running max
            pltpu.VMEM((H, t, 1), jnp.float32),   # running denominator
            pltpu.VMEM((H, t, d), jnp.float32),   # output accumulator
            pltpu.VMEM((t, D3), compute_dtype),   # normalized ctx (lane-dense)
        ],
        compiler_params=pltpu.CompilerParams(
            dimension_semantics=("parallel", "parallel", "arbitrary"),
            vmem_limit_bytes=VMEM_LIMIT_BYTES),
        cost_estimate=attn_cost,
    )(q, k, v, w_proj_c, b_proj_c)

    return out


# ---------------------------------------------------------------------------
# Pure-JAX f32 reference (same math as the PyTorch module) for a sanity check.
# ---------------------------------------------------------------------------
def reference_forward(x, w_attn, w_proj, b_attn, b_proj, masked_bias, num_head):
    B, M, N = x.shape
    D_attn = w_attn.shape[1]
    D3 = D_attn // 3
    H = num_head
    d = D3 // H
    qkv = x @ w_attn + b_attn
    q, k, v = (qkv[:, :, i * D3:(i + 1) * D3].reshape(B, M, H, d)
               .transpose(0, 2, 1, 3) for i in range(3))
    s = jnp.einsum("bhqd,bhkd->bhqk", q, k) / math.sqrt(d)
    mask = jnp.tril(jnp.ones((M, M), dtype=bool))
    s = jnp.where(mask, s, masked_bias)
    p = jax.nn.softmax(s, axis=-1)
    o = jnp.einsum("bhqk,bhkd->bhqd", p, v)
    o = o.transpose(0, 2, 1, 3).reshape(B, M, D3)
    return o @ w_proj + b_proj


if __name__ == "__main__":
    # Small GPT-2-style config: B=2, seq M=8, embed N=32, heads H=4, d=8.
    B, M, N, H = 2, 8, 32, 4
    D_attn = 3 * N                      # fused qkv dim; D_attn // 3 == N
    masked_bias = -1e4                  # GPT-2 masked_bias value

    key = jax.random.PRNGKey(0)
    kx, kwa, kwp, kba, kbp = jax.random.split(key, 5)
    x = jax.random.normal(kx, (B, M, N), dtype=jnp.float32)
    w_attn = jax.random.normal(kwa, (N, D_attn), dtype=jnp.float32) * 0.05
    w_proj = jax.random.normal(kwp, (D_attn // 3, N), dtype=jnp.float32) * 0.05
    b_attn = jax.random.normal(kba, (D_attn,), dtype=jnp.float32) * 0.01
    b_proj = jax.random.normal(kbp, (D_attn // 3,), dtype=jnp.float32) * 0.01

    ref = reference_forward(x, w_attn, w_proj, b_attn, b_proj, masked_bias, H)

    # f32 compute path: tight check of the flash/tiling/fusion structure.
    out_f32 = attention_block_forward(x, w_attn, w_proj, b_attn, b_proj,
                                      masked_bias, H,
                                      compute_dtype=jnp.float32)
    out_f32 = jax.block_until_ready(out_f32)
    assert out_f32.shape == (B, M, N)
    assert jnp.allclose(out_f32, ref, atol=2e-3, rtol=2e-3)

    # bf16 matmul-input path (production config for v5e/v6e/v7x MXU),
    # f32 accumulation and f32 softmax statistics.
    out_bf16 = attention_block_forward(x, w_attn, w_proj, b_attn, b_proj,
                                       masked_bias, H,
                                       compute_dtype=jnp.bfloat16)
    out_bf16 = jax.block_until_ready(out_bf16)
    assert out_bf16.shape == (B, M, N)
    assert jnp.allclose(out_bf16, ref, atol=3e-2, rtol=3e-2)

    print("KERNEL_OK")
</pallas_src>

<mosaic_0001>
module attributes {stable_mosaic.version = 11 : i64} {
  func.func @_qkv_kernel(%arg0: i32, %arg1: i32, %arg2: memref<1x8x32xf32, #tpu.memory_space<vmem>>, %arg3: memref<32x96xf32, #tpu.memory_space<vmem>>, %arg4: memref<1x96xf32, #tpu.memory_space<vmem>>, %arg5: memref<1x8x32xf32, #tpu.memory_space<vmem>>, %arg6: memref<1x8x32xf32, #tpu.memory_space<vmem>>, %arg7: memref<1x8x32xf32, #tpu.memory_space<vmem>>) attributes {dimension_semantics = [#tpu.dimension_semantics<parallel>, #tpu.dimension_semantics<parallel>], iteration_bounds = array<i64: 2, 1>, scalar_prefetch = 0 : i64, scratch_operands = 0 : i64, tpu.core_type = #tpu.core_type<tc>, window_params = [{transform_indices = @transform_0, window_bounds = array<i64: 1, 8, 32>}, {pipeline_mode = #tpu.pipeline_mode<synchronous>, transform_indices = @transform_1, window_bounds = array<i64: 32, 96>}, {pipeline_mode = #tpu.pipeline_mode<synchronous>, transform_indices = @transform_2, window_bounds = array<i64: 1, 96>}, {transform_indices = @transform_3, window_bounds = array<i64: 1, 8, 32>}, {transform_indices = @transform_4, window_bounds = array<i64: 1, 8, 32>}, {transform_indices = @transform_5, window_bounds = array<i64: 1, 8, 32>}]} {
    %c0 = arith.constant 0 : index
    %c0_0 = arith.constant 0 : index
    %c0_1 = arith.constant 0 : index
    %0 = vector.load %arg2[%c0, %c0_0, %c0_1] : memref<1x8x32xf32, #tpu.memory_space<vmem>>, vector<1x8x32xf32>
    %1 = vector.shape_cast %0 : vector<1x8x32xf32> to vector<8x32xf32>
    %c0_2 = arith.constant 0 : index
    %c0_3 = arith.constant 0 : index
    %2 = vector.load %arg3[%c0_2, %c0_3] : memref<32x96xf32, #tpu.memory_space<vmem>>, vector<32x96xf32>
    %cst = arith.constant dense<0.000000e+00> : vector<8x96xf32>
    %3 = tpu.matmul %1, %2, %cst {dimension_numbers = #tpu.dot_dimension_numbers<[1], [0], [0], [1], [0, 0, 1, 1], [], []>} : vector<8x32xf32>, vector<32x96xf32>, vector<8x96xf32> -> vector<8x96xf32>
    %c0_4 = arith.constant 0 : index
    %c0_5 = arith.constant 0 : index
    %4 = vector.load %arg4[%c0_4, %c0_5] : memref<1x96xf32, #tpu.memory_space<vmem>>, vector<1x96xf32>
    %5 = vector.broadcast %4 : vector<1x96xf32> to vector<8x96xf32>
    %6 = arith.addf %3, %5 : vector<8x96xf32>
    %7 = vector.extract_strided_slice %6 {offsets = [0, 0], sizes = [8, 32], strides = [1, 1]} : vector<8x96xf32> to vector<8x32xf32>
    %cst_6 = arith.constant 0.353553385 : f32
    %8 = vector.broadcast %cst_6 : f32 to vector<8x32xf32>
    %9 = arith.mulf %7, %8 : vector<8x32xf32>
    %c0_7 = arith.constant 0 : index
    %c0_8 = arith.constant 0 : index
    %c0_9 = arith.constant 0 : index
    %10 = vector.load %arg5[%c0_7, %c0_8, %c0_9] : memref<1x8x32xf32, #tpu.memory_space<vmem>>, vector<1x8x32xf32>
    %11 = vector.shape_cast %10 : vector<1x8x32xf32> to vector<8x32xf32>
    %12 = vector.shape_cast %9 : vector<8x32xf32> to vector<1x8x32xf32>
    tpu.vector_store %arg5[%c0_7, %c0_8, %c0_9], %12 {strides = array<i32>} : memref<1x8x32xf32, #tpu.memory_space<vmem>>, vector<1x8x32xf32>,
    %13 = vector.extract_strided_slice %6 {offsets = [0, 32], sizes = [8, 32], strides = [1, 1]} : vector<8x96xf32> to vector<8x32xf32>
    %c0_10 = arith.constant 0 : index
    %c0_11 = arith.constant 0 : index
    %c0_12 = arith.constant 0 : index
    %14 = vector.load %arg6[%c0_10, %c0_11, %c0_12] : memref<1x8x32xf32, #tpu.memory_space<vmem>>, vector<1x8x32xf32>
    %15 = vector.shape_cast %14 : vector<1x8x32xf32> to vector<8x32xf32>
    %16 = vector.shape_cast %13 : vector<8x32xf32> to vector<1x8x32xf32>
    tpu.vector_store %arg6[%c0_10, %c0_11, %c0_12], %16 {strides = array<i32>} : memref<1x8x32xf32, #tpu.memory_space<vmem>>, vector<1x8x32xf32>,
    %17 = vector.extract_strided_slice %6 {offsets = [0, 64], sizes = [8, 32], strides = [1, 1]} : vector<8x96xf32> to vector<8x32xf32>
    %c0_13 = arith.constant 0 : index
    %c0_14 = arith.constant 0 : index
    %c0_15 = arith.constant 0 : index
    %18 = vector.load %arg7[%c0_13, %c0_14, %c0_15] : memref<1x8x32xf32, #tpu.memory_space<vmem>>, vector<1x8x32xf32>
    %19 = vector.shape_cast %18 : vector<1x8x32xf32> to vector<8x32xf32>
    %20 = vector.shape_cast %17 : vector<8x32xf32> to vector<1x8x32xf32>
    tpu.vector_store %arg7[%c0_13, %c0_14, %c0_15], %20 {strides = array<i32>} : memref<1x8x32xf32, #tpu.memory_space<vmem>>, vector<1x8x32xf32>,
    return
  }
  func.func @transform_0(%arg0: i32, %arg1: i32) -> (i32, i32, i32) {
    %c0_i32 = arith.constant 0 : i32
    %c0_i32_0 = arith.constant 0 : i32
    return %arg0, %arg1, %c0_i32 : i32, i32, i32
  }
  func.func @transform_1(%arg0: i32, %arg1: i32) -> (i32, i32) {
    %c0_i32 = arith.constant 0 : i32
    %c0_i32_0 = arith.constant 0 : i32
    %c0_i32_1 = arith.constant 0 : i32
    return %c0_i32, %c0_i32_0 : i32, i32
  }
  func.func @transform_2(%arg0: i32, %arg1: i32) -> (i32, i32) {
    %c0_i32 = arith.constant 0 : i32
    %c0_i32_0 = arith.constant 0 : i32
    %c0_i32_1 = arith.constant 0 : i32
    return %c0_i32, %c0_i32_0 : i32, i32
  }
  func.func @transform_3(%arg0: i32, %arg1: i32) -> (i32, i32, i32) {
    %c0_i32 = arith.constant 0 : i32
    %c0_i32_0 = arith.constant 0 : i32
    return %arg0, %arg1, %c0_i32 : i32, i32, i32
  }
  func.func @transform_4(%arg0: i32, %arg1: i32) -> (i32, i32, i32) {
    %c0_i32 = arith.constant 0 : i32
    %c0_i32_0 = arith.constant 0 : i32
    return %arg0, %arg1, %c0_i32 : i32, i32, i32
  }
  func.func @transform_5(%arg0: i32, %arg1: i32) -> (i32, i32, i32) {
    %c0_i32 = arith.constant 0 : i32
    %c0_i32_0 = arith.constant 0 : i32
    return %arg0, %arg1, %c0_i32 : i32, i32, i32
  }
}

</mosaic_0001>

<bundles_post_ra>
// kernel: tpu_custom_call.1
= control target key start
LH: loop header
LB: loop body
LE: loop exit
PB: predicated region body
PF: predicated region fallthrough
CT: control target
= control target key end

     0   :  { %s1198_s0 = inlined_call_operand.hbm [shape: f32[2,8,32], index: 0, kind: input, shape index: {}]   ;;  %s1199_s1 = inlined_call_operand.hbm [shape: f32[32,96], index: 1, kind: input, shape index: {}]   ;;  %s1200_s2 = inlined_call_operand.vmem [shape: f32[1,96], index: 2, kind: input, shape index: {}]   ;;  %s1201_s3 = inlined_call_operand.hbm [shape: f32[2,8,32], index: 3, kind: output, shape index: {0}]   ;;  %s1202_s4 = inlined_call_operand.hbm [shape: f32[2,8,32], index: 4, kind: output, shape index: {1}]   ;;  %s1203_s5 = inlined_call_operand.hbm [shape: f32[2,8,32], index: 5, kind: output, shape index: {2}]  }
   0x1   :  { %1207 = sst [smem:[#allocation16_spill]] %s1199_s1 }
   0x2   :  { %11 = vsyncpa [#allocation3], 0 }
   0x3   :  { %13 = vsyncpa [#allocation3 + $0x1], 0 }
   0x4   :  { %14 = vsyncpa [#allocation6], 0 }
   0x5   :  { %15 = vsyncpa [#allocation4], 0 }
   0x6   :  { %17 = vsyncpa [#allocation4 + $0x1], 0 }
   0x7   :  { %18 = vsyncpa [#allocation9], 0 }
   0x8   :  { %20 = vsyncpa [#allocation9 + $0x1], 0  ;;  %s962_s18 = smov 0   ;;  %s964_s19 = smov 0  }
   0x9   :  { %s966_s20 = smov 0   ;;  %s968_s21 = smov 0  }
   0xa   :  { %s970_s22 = smov 0   ;;  %s972_s23 = smov 0  }
   0xb LB: > { %s993_s24 = sadd.s32 4294967295, %s919_s23   ;;  %s1204_s25 = sadd.s32 4294967294, %s919_s23   ;;  %s919_s23 = sphi %s972_s23, %s26_s23   ;;  %s915_s22 = sphi %s970_s22, %s1228_s22   ;;  %s911_s21 = sphi %s968_s21, %s1227_s21   ;;  %s907_s20 = sphi %s966_s20, %s1226_s20   ;;  %s903_s19 = sphi %s964_s19, %s1225_s19   ;;  %s899_s18 = sphi %s962_s18, %s1224_s18  }
   0xc   : > { %p60_p0 = scmp.ne.s32.totalorder %s903_s19, %s899_s18  ;;  %p1206_p1 = scmp.eq.s32.totalorder %s993_s24, 0 }
   0xd   : > { %p134_p3 = scmp.eq.s32.totalorder %s1204_s25, 1  ;;  %p599_p5 = scmp.ge.s32.totalorder %s919_s23, 1 }
   0xe   : > { %p1004_p4 = por %p1206_p1, %p60_p0  ;;  %p197_p7 = scmp.lt.s32.totalorder %s919_s23, 3 }
   0xf   : > { %p1009_p6 = por %p134_p3, %p60_p0  ;;  %s921_s29 = smov [#allocation5]  }
  0x10   : > { %p1014_p8 = pnand %p599_p5, %p197_p7  ;;  %s209_s30 = sshll.u32 %s921_s29, 4  ;;  %s210_s30 = int_to_ptr.vmem [resolvable:$true] %s209_s30 }
  0x11   : > { %s1209_s27 = scalar_select %p1009_p6, 1, 0 }
  0x12   : > { %p648_p9 = pneg %p1014_p8  ;;  %s38_s7 = sadd.s32 1, %s915_s22 }
  0x13   : > { %s736_s8 = scalar_lea.vmem %s210_s30, 512  ;;  %p744_p5 = scmp.lt.s32.totalorder %s210_s30, %s210_s30 }
  0x14   : > { %p1023_p11 = pnand %p648_p9, %p1206_p1  ;;  %p737_p13 = scmp.ne.s32.totalorder %s210_s30, %s736_s8 }
  0x15   : > { %p745_p7 = scmp.lt.s32.totalorder %s736_s8, %s736_s8 }
  0x16   : > { %p727_p12 = pneg %p1023_p11 }
  0x17   : > { %p746_p2 = por %p745_p7, %p744_p5 }
  0x18   : > { %p739_p0 = pnand %p737_p13, %p727_p12 }
  0x1a   : > { %p740_p3 = pneg %p739_p0 }
  0x1c   : > { %p747_p6 = pnand %p746_p2, %p740_p3 }
  0x1e   : > { %750 = shalt.err (!%p747_p6)
}
  0x1f   : > { %s922_s9 = smov 128   ;;  %s923_s10 = smov 8  }
  0x20   : > { %s1212_s1 = sld [smem:[#allocation16_spill]]  ;;  %p40_p2 = scmp.ge.s32.totalorder %s38_s7, 2 }
  0x21   : > { %s47_s13 = sadd.s32 1, %s907_s20  ;;  %p54_p6 = scmp.ne.s32.totalorder %s907_s20, %s903_s19 }
  0x22   : > { %p55_p9 = scmp.eq.s32.totalorder %s919_s23, 0  ;;  %s1230_s7 = smov (%p40_p2, %s38_s7), 0 }
  0x23   : > { %1213 = sst [smem:[#allocation15_spill]] %s1230_s7  ;;  %p1215_p13 = scmp.eq.s32.totalorder %s993_s24, 1 }
  0x24   : > { %p1041_p12 = por %p55_p9, %p54_p6  ;;  %s42_s16 = ssub.s32 %s915_s22, %s1230_s7 }
  0x25   : > { %p1047_p0 = por %p1215_p13, %p54_p6  ;;  %p667_p3 = scmp.lt.s32.totalorder %s919_s23, 2 }
  0x26   : > { %651 = dma.hbm_to_vmem [thread:$0]  (!%p1023_p11), %s1212_s1, 512, %s210_s30, [#allocation6], %s922_s9, %s922_s9, %s923_s10  }
  0x27   : > { %p45_p11 = scmp.eq.s32.totalorder %s42_s16, 0  ;;  %s226_s17 = sand.u32 1, %s907_s20  }
  0x28   : > { %s602_s29 = sshll.u32 %s226_s17, 3  ;;  %s603_s6 = sshll.u32 %s915_s22, 7 }
  0x29   : > { %s1056_s30 = scalar_select %p45_p11, %s907_s20, %s47_s13  }
  0x2a   : > { %s236_s10 = scalar_lea.hbm %s1198_s0, %s603_s6  ;;  %s230_s11 = scalar_lea.vmem [#allocation2], %s602_s29 }
  0x2b   : > { %s238_s12 = sshll.u32 %s230_s11, 4  ;;  %p1064_p5 = pnand %p667_p3, %p1041_p12  ;;  %s239_s12 = int_to_ptr.vmem [resolvable:$true] %s238_s12 }
  0x2c   : > { %s227_s1 = scalar_lea.sflag [#allocation3], %s226_s17  ;;  %s764_s16 = scalar_lea.vmem %s239_s12, 128 }
  0x2d   : > { %p753_p7 = pneg %p1064_p5  ;;  %p765_p2 = scmp.ne.s32.totalorder %s239_s12, %s764_s16 }
  0x2e   : > { %s924_s13 = smov [#allocation2]  }
  0x2f   : > { %p767_p6 = pnand %p765_p2, %p753_p7  ;;  %s769_s7 = sshll.u32 %s924_s13, 4  ;;  %s770_s7 = int_to_ptr.vmem [resolvable:$false] %s769_s7 }
  0x30   : > { %s771_s6 = scalar_lea.vmem %s770_s7, 256  ;;  %p772_p13 = scmp.lt.s32.totalorder %s239_s12, %s770_s7 }
  0x31   : > { %p768_p9 = pneg %p767_p6  ;;  %p773_p11 = scmp.lt.s32.totalorder %s771_s6, %s764_s16 }
  0x33   : > { %p774_p10 = por %p773_p11, %p772_p13 }
  0x35   : > { %p775_p1 = pnand %p774_p10, %p768_p9 }
  0x37   : > { %778 = shalt.err (!%p775_p1)
}
  0x38   : > { %655 = dma.hbm_to_vmem [thread:$0]  (!%p1064_p5), %s236_s10, 128, %s239_s12, %s227_s1  }
  0x39   : > { %247 = sbr.rel (%p1014_p8) target bundleno = 420 (0x1a4), region = 32  ;;  %s1075_s14 = sand.u32 (!%p1014_p8), 1, %s903_s19  }
  0x3a   : > { %s1078_s17 = sshll.u32 (!%p1014_p8), %s1075_s14, 3  ;;  %s250_s7 = scalar_lea.sflag (!%p1014_p8), [#allocation3], %s1075_s14 }
  0x3b   : > { %s253_s29 = scalar_lea.vmem (!%p1014_p8), [#allocation2], %s1078_s17 }
  0x3e   : > { %882 = dma.done.wait (%p1004_p4), %s250_s7, 128  }
  0x3f   : > { %884 = vsyncadd (%p1004_p4), %s250_s7, 4294967168  ;;  %p1218_p1 = scmp.eq.s32.totalorder %s993_s24, 0 }
  0x41   : > { %886 = dma.done.wait (%p1218_p1), [#allocation6], 512   ;;  %p1219_p8 = pmov %p1218_p1 }
  0x42   : > { %v925_v0 = vmov 0.0   ;;  %vm926_vm0 = vmmov 0   ;;  %v298_v1 = vld [vmem:[#allocation5 + $0x18] sm:$0xff]  ;;  %v297_v2 = vld [vmem:[#allocation5 + $0x10] sm:$0xff]  ;;  %v296_v3 = vld [vmem:[#allocation5 + $0x8] sm:$0xff]  ;;  %vm306_vm1 = vcmask 261120  }
  0x43   : > { %888 = vsyncadd (%p1219_p8), [#allocation6], 4294966784  ;;  %625 = vmatprep.subr.mxu0 %v925_v0  ;;  %633 = vmatprep.mubr.msk.f32.mxu0 %vm926_vm0, %v925_v0  ;;  %v295_v4 = vld [vmem:[#allocation5] sm:$0xff]  ;;  %v294_v5 = vld [vmem:[%s253_s29] sm:$0xff]  ;;  %s1095_s26 = sshll.u32 %s911_s21, 7  ;;  %s279_s28 = scalar_lea.vmem [#allocation7], %s1078_s17 }
  0x44   : > { %626 = vmatpush3.msra.mxu0 %v298_v1  ;;  %v610_v6 = vld [vmem:[%s1200_s2] ss:$0 sm:$0xff]  ;;  %s416_s8 = sshll.u32 %s279_s28, 4  ;;  %s927_s9 = smov 96   ;;  %s417_s8 = int_to_ptr.vmem [resolvable:$true] %s416_s8 }
  0x45   : > { %627 = vmatprep.subr.mxu0 %v925_v0  ;;  %s414_s12 = scalar_lea.hbm %s1201_s3, %s1095_s26  ;;  %s392_s16 = scalar_lea.sflag [#allocation4], %s1075_s14 }
  0x46   : > { %628 = vmatpush3.msra.mxu0 %v297_v2  ;;  %s779_s13 = scalar_lea.vmem %s417_s8, 128  ;;  %s928_s21 = smov [#allocation7]  }
  0x47   : > { %629 = vmatprep.subr.mxu0 %v925_v0  ;;  %p780_p4 = scmp.ne.s32.totalorder %s417_s8, %s779_s13  ;;  %s783_s6 = sshll.u32 %s928_s21, 4  ;;  %s784_s6 = int_to_ptr.vmem [resolvable:$false] %s783_s6 }
  0x48   : > { %630 = vmatpush3.msra.mxu0 %v296_v3  ;;  %s785_s7 = scalar_lea.vmem %s784_s6, 256  ;;  %p786_p3 = scmp.lt.s32.totalorder %s417_s8, %s784_s6 }
  0x49   : > { %631 = vmatprep.subr.mxu0 %v925_v0  ;;  %p781_p10 = pnand %p780_p4, %p1047_p0  ;;  %p787_p5 = scmp.lt.s32.totalorder %s785_s7, %s779_s13 }
  0x4a   : > { %632 = vmatpush3.msra.mxu0 %v295_v4 }
  0x4b   : > { %634 = vmatmul.mubr.msk.f32.vlgmr.msra.gmra.mxu0 %vm306_vm1, %v294_v5  ;;  %p782_p12 = pneg %p781_p10  ;;  %p788_p7 = por %p787_p5, %p786_p3 }
  0x4d   : > { %p789_p2 = pnand %p788_p7, %p782_p12 }
 0x10b   : > { %v376_v7 = vpop.f32.mrf.mxu0 }
 0x10c   : > { %v377_v8 = vadd.f32 %v610_v6, %v376_v7 }
 0x10d   : > { %v635_v9 = vpop.f32.mrf.mxu0 }
 0x10e   : > { %v380_v10 = vmul.f32 0.35355338, %v377_v8  ;;  %383 = vrot.lane.b32.xlu0 %v377_v8, %s927_s9 }
 0x110   : > { %381 = vst.msk [vmem:[%s279_s28] sm:$0xff] %vm306_vm1, %v380_v10 }
 0x111   : > { %792 = shalt.err (!%p789_p2)
}
 0x112   : > { %s793_s29 = scalar_lea.hbm %s414_s12, 128  ;;  %s797_s25 = scalar_lea.hbm %s1201_s3, 256 }
 0x113   : > { %p794_p6 = scmp.ne.s32.totalorder %s414_s12, %s793_s29  ;;  %p798_p11 = scmp.lt.s32.totalorder %s414_s12, %s1201_s3 }
 0x114   : > { %p799_p1 = scmp.lt.s32.totalorder %s797_s25, %s793_s29 }
 0x115   : > { %p795_p9 = pnand %p794_p6, %p1047_p0 }
 0x116   : > { %p800_p8 = por %p799_p1, %p798_p11 }
 0x117   : > { %p796_p13 = pneg %p795_p9 }
 0x119   : > { %p801_p4 = pnand %p800_p8, %p796_p13 }
 0x11b   : > { %804 = shalt.err (!%p801_p4)
}
 0x11c   : > { %642 = dma.vmem_to_hbm [thread:$0]  (%p1047_p0), %s417_s8, 128, %s414_s12, %s392_s16  }
 0x11d   : > { %s929_s10 = smov 64   ;;  %s396_s11 = sand.u32 1, %s993_s24  }
 0x11e   : > { %387 = vrot.lane.b32.xlu0 %v377_v8, %s929_s10  ;;  %s286_s13 = scalar_lea.vmem [#allocation8], %s1078_s17  ;;  %s1122_s29 = scalar_lea.hbm %s1202_s4, %s1095_s26 }
 0x11f   : > { %s430_s21 = sshll.u32 %s286_s13, 4  ;;  %s293_s14 = scalar_lea.vmem [#allocation10], %s1078_s17  ;;  %s1124_s21 = int_to_ptr.vmem [resolvable:$true] %s430_s21 }
 0x120   : > { %s444_s1 = sshll.u32 %s293_s14, 4  ;;  %s1130_s8 = scalar_lea.sflag [#allocation9], %s396_s11  ;;  %s445_s1 = int_to_ptr.vmem [resolvable:$true] %s444_s1 }
 0x121   : > { %s805_s24 = scalar_lea.vmem %s1124_s21, 128  ;;  %s930_s12 = smov [#allocation8]  }
 0x122   : > { %p806_p10 = scmp.ne.s32.totalorder %s1124_s21, %s805_s24  ;;  %s809_s16 = sshll.u32 %s930_s12, 4  ;;  %s810_s16 = int_to_ptr.vmem [resolvable:$false] %s809_s16 }
 0x123   : > { %s811_s25 = scalar_lea.vmem %s810_s16, 256  ;;  %p812_p5 = scmp.lt.s32.totalorder %s1124_s21, %s810_s16 }
 0x124   : > { %p807_p12 = pnand %p806_p10, %p1047_p0  ;;  %p813_p7 = scmp.lt.s32.totalorder %s811_s25, %s805_s24 }
 0x126   : > { %p808_p3 = pneg %p807_p12  ;;  %p814_p2 = por %p813_p7, %p812_p5 }
 0x128   : > { %p815_p6 = pnand %p814_p2, %p808_p3 }
 0x180   : > { %v384_v11 = vpop.permute.xlu0 %383 }
 0x181   : > { %386 = vst.msk [vmem:[%s286_s13] sm:$0xff] %vm306_vm1, %v384_v11 }
 0x182   : > { %818 = shalt.err (!%p815_p6)
}
 0x183   : > { %s819_s28 = scalar_lea.hbm %s1122_s29, 128  ;;  %s823_s11 = scalar_lea.hbm %s1202_s4, 256 }
 0x184   : > { %p820_p9 = scmp.ne.s32.totalorder %s1122_s29, %s819_s28  ;;  %p824_p1 = scmp.lt.s32.totalorder %s1122_s29, %s1202_s4 }
 0x185   : > { %p825_p8 = scmp.lt.s32.totalorder %s823_s11, %s819_s28 }
 0x186   : > { %p821_p13 = pnand %p820_p9, %p1047_p0 }
 0x187   : > { %p826_p4 = por %p825_p8, %p824_p1 }
 0x188   : > { %p822_p11 = pneg %p821_p13 }
 0x18a   : > { %p827_p10 = pnand %p826_p4, %p822_p11 }
 0x18c   : > { %830 = shalt.err (!%p827_p10)
}
 0x18d   : > { %643 = dma.vmem_to_hbm [thread:$0]  (%p1047_p0), %s1124_s21, 128, %s1122_s29, %s1130_s8  }
 0x18e   : > { %s442_s12 = scalar_lea.hbm %s1203_s5, %s1095_s26  ;;  %s831_s16 = scalar_lea.vmem %s445_s1, 128 }
 0x18f   : > { %p832_p12 = scmp.ne.s32.totalorder %s445_s1, %s831_s16  ;;  %s931_s25 = smov [#allocation10]  }
 0x190   : > { %v388_v12 = vpop.permute.xlu0 %387  ;;  %s835_s28 = sshll.u32 %s931_s25, 4  ;;  %s836_s28 = int_to_ptr.vmem [resolvable:$false] %s835_s28 }
 0x191   : > { %390 = vst.msk [vmem:[%s293_s14] sm:$0xff] %vm306_vm1, %v388_v12  ;;  %p833_p3 = pnand %p832_p12, %p1047_p0  ;;  %s837_s9 = scalar_lea.vmem %s836_s28, 256 }
 0x192   : > { %p838_p7 = scmp.lt.s32.totalorder %s445_s1, %s836_s28  ;;  %p839_p2 = scmp.lt.s32.totalorder %s837_s9, %s831_s16 }
 0x193   : > { %p834_p5 = pneg %p833_p3 }
 0x194   : > { %p840_p6 = por %p839_p2, %p838_p7 }
 0x196   : > { %p841_p9 = pnand %p840_p6, %p834_p5 }
 0x198   : > { %844 = shalt.err (!%p841_p9)
}
 0x199   : > { %s845_s26 = scalar_lea.hbm %s442_s12, 128  ;;  %s849_s29 = scalar_lea.hbm %s1203_s5, 256 }
 0x19a   : > { %p846_p13 = scmp.ne.s32.totalorder %s442_s12, %s845_s26  ;;  %p850_p8 = scmp.lt.s32.totalorder %s442_s12, %s1203_s5 }
 0x19b   : > { %p851_p4 = scmp.lt.s32.totalorder %s849_s29, %s845_s26 }
 0x19c   : > { %p847_p11 = pnand %p846_p13, %p1047_p0 }
 0x19d   : > { %p852_p10 = por %p851_p4, %p850_p8 }
 0x19e   : > { %p848_p1 = pneg %p847_p11 }
 0x1a0   : > { %p853_p12 = pnand %p852_p10, %p848_p1 }
 0x1a2   : > { %856 = shalt.err (!%p853_p12)
}
 0x1a3   : > { %644 = dma.vmem_to_hbm [thread:$0]  (%p1047_p0), %s445_s1, 128, %s442_s12, %s1130_s8  }
 0x1a4 PF: > { %s456_s11 = sand.u32 1, %s899_s18   ;;  %p1220_p3 = scmp.ne.s32.totalorder %s1209_s27, 0 }
 0x1a5   : > { %p1221_p5 = scmp.ge.s32.totalorder %s919_s23, 2  ;;  %s457_s13 = scalar_lea.sflag [#allocation4], %s456_s11 }
 0x1a7   : > { %p657_p7 = pnand %p1221_p5, %p1220_p3 }
 0x1a9   : > { %p658_p2 = pneg %p657_p7 }
 0x1ab   : > { %890 = dma.done.wait (%p658_p2), %s457_s13, 128  }
 0x1ac   : > { %892 = vsyncadd (%p658_p2), %s457_s13, 4294967168  ;;  %s1222_s6 = sadd.s32 4294967294, %s919_s23  }
 0x1ad   : > { %s465_s7 = sand.u32 1, %s1222_s6  }
 0x1ae   : > { %s466_s24 = scalar_lea.sflag [#allocation9], %s465_s7 }
 0x1af   : > { %894 = dma.done.wait (%p658_p2), %s466_s24, 256  }
 0x1b0   : > { %896 = vsyncadd (%p658_p2), %s466_s24, 4294967040  ;;  %s26_s23 = sadd.s32 1, %s919_s23   ;;  %s1223_s27 = sld [smem:[#allocation15_spill]] }
 0x1b1   : > { %p23_p0 = scmp.ge.s32.totalorder %s26_s23, 4   ;;  %s1224_s18 = smov %s903_s19 }
 0x1b2   : > { %s1225_s19 = smov %s907_s20  ;;  %s1226_s20 = smov %s1056_s30 }
 0x1b3   : > { %s1227_s21 = smov %s915_s22  ;;  %25 = sbr.rel (!%p23_p0) target bundleno = 11 (0xb), region = 113 }
 0x1b6   : > { %s1228_s22 = smov %s1223_s27 }
 0x1b8   :  { %480 = vsyncpa [#allocation3], 1 }
 0x1b9   :  { %482 = vsyncpa [#allocation3 + $0x1], 1 }
 0x1ba   :  { %483 = vsyncpa [#allocation6], 1 }
 0x1bb   :  { %484 = vsyncpa [#allocation4], 1 }
 0x1bc   :  { %486 = vsyncpa [#allocation4 + $0x1], 1 }
 0x1bd   :  { %487 = vsyncpa [#allocation9], 1 }
 0x1be   :  { %489 = vsyncpa [#allocation9 + $0x1], 1 }

</bundles_post_ra>
